<compile_context>
chip_gen: v7x
topology: tpu7x:2x2x1
jax: 0.10.0
libtpu: 0.0.40
codegen_flags: <defaults>
</compile_context>

<pallas_src>
import math
import functools

import jax
import jax.numpy as jnp
from jax import lax
from jax.experimental import pallas as pl
from jax.experimental.pallas import tpu as pltpu


def _round_up(x, m):
    return ((x + m - 1) // m) * m


def _cdiv(a, b):
    return (a + b - 1) // b


def _arcface_kernel(labels_ref, emb_ref, wt_ref, out_ref, *,
                    cos_m, sin_m, scale, tn):
    """One (class-tile, batch-tile) grid step.

    labels_ref: [bb, 1]  int32
    emb_ref:    [bb, D]  bf16, rows pre-L2-normalized
    wt_ref:     [D, tn]  bf16, columns pre-L2-normalized (weight.T tile)
    out_ref:    [bb, tn] f32 scaled logits
    """
    c = pl.program_id(0)                                   # class-tile index (outer axis)

    # cosine = emb_n @ w_n.T for this class tile; MXU-native, f32 accumulation.
    cosine = jnp.dot(emb_ref[...], wt_ref[...],
                     preferred_element_type=jnp.float32)   # [bb, tn]

    bb, tnn = cosine.shape
    cls_idx = c * tn + lax.broadcasted_iota(jnp.int32, (bb, tnn), 1)
    one_hot = cls_idx == labels_ref[...]                   # [bb, tn] bool (labels [bb,1])

    # ArcFace margin applied only at the label column of each row ([bb,1] work);
    # sqrt argument clamped at 0 to avoid NaN from |cosine| > 1 rounding.
    cos_at = jnp.sum(jnp.where(one_hot, cosine, 0.0), axis=1, keepdims=True)
    sin_at = jnp.sqrt(jnp.maximum(1.0 - cos_at * cos_at, 0.0))
    phi_at = cos_at * cos_m - sin_at * sin_m               # [bb, 1]
    # TODO(synk): the reference module has no easy_margin / theta-threshold
    # fallback, so none is implemented here.

    out = scale * cosine + jnp.where(one_hot, scale * (phi_at - cos_at), 0.0)
    out_ref[...] = out.astype(out_ref.dtype)


def _vmem_budget_bytes():
    phys = 64 * 2 ** 20                     # conservative default = v7x per-TC VMEM
    try:
        phys = int(getattr(pltpu.get_tpu_info(), "vmem_capacity_bytes", phys))
    except Exception:
        pass
    return int(phys * 0.75)


def _vmem_estimate(bb, tn, D):
    # Double-buffered pipeline blocks + in-kernel temporaries (f32 cosine,
    # int32 iota / one-hot masks, f32 scaled output, staging).
    blocks = 2 * (bb * 128 * 4              # labels (bb,1) int32 (lane-padded)
                  + bb * D * 2              # embeddings bf16
                  + D * tn * 2              # weight.T tile bf16
                  + bb * tn * 4)            # output block f32
    temps = 4 * bb * tn * 4 + bb * tn * 2
    return blocks + temps


def arcface_forward(embeddings, weight, labels, *, margin=0.5, scale=64.0,
                    block_c=1024, block_b=512):
    """ArcFace scaled logits.

    embeddings: [B, D] float32
    weight:     [C, D] float32 (un-normalized class centers)
    labels:     [B]    integer class ids
    returns:    [B, C] float32 scaled logits
    """
    B, D = embeddings.shape
    C, D2 = weight.shape
    assert D == D2

    # --- Hoisted L2 normalization (once, in f32; matches F.normalize p=2 dim=1) ---
    emb = embeddings.astype(jnp.float32)
    emb_n = (emb * lax.rsqrt(
        jnp.maximum(jnp.sum(emb * emb, axis=1, keepdims=True), 1e-24))
             ).astype(jnp.bfloat16)                                    # [B, D]

    w = weight.astype(jnp.float32)
    inv_wn = lax.rsqrt(
        jnp.maximum(jnp.sum(w * w, axis=1, keepdims=True), 1e-24))     # [C, 1]
    # Normalize in f32, cast to bf16 and transpose to [D, C]; the transpose is on
    # the read side so it fuses with the elementwise normalize+cast pass and the
    # kernel streams an MXU-native RHS (no in-kernel XLU transpose).
    wt_n = (w.T * inv_wn.reshape(1, C)).astype(jnp.bfloat16)           # [D, C]

    labels_i32 = labels.astype(jnp.int32)

    # --- Tile selection: cover B in one tile first, then size the class tile ---
    block_b = max(8, _round_up(block_b, 8))
    block_c = max(128, _round_up(block_c, 128))
    Cp128 = _round_up(C, 128)

    bb = min(_round_up(B, 8), block_b)
    n_ct = _cdiv(Cp128, block_c)
    if Cp128 >= 512:
        n_ct = max(n_ct, 2)     # >=2 class tiles so v7x megacore can shard classes
    tn = _round_up(_cdiv(Cp128, n_ct), 128)

    budget = _vmem_budget_bytes()
    while _vmem_estimate(bb, tn, D) > budget and tn > 128:
        tn = max(128, ((tn // 2) // 128) * 128)
    while _vmem_estimate(bb, tn, D) > budget and bb > 8:
        bb = max(8, ((bb // 2) // 8) * 8)

    n_ct = _cdiv(Cp128, tn)
    Cp = n_ct * tn
    Bp = _round_up(B, bb)
    n_bt = Bp // bb

    if Bp != B:
        emb_n = jnp.pad(emb_n, ((0, Bp - B), (0, 0)))
        labels_i32 = jnp.pad(labels_i32, (0, Bp - B))
    if Cp != C:
        wt_n = jnp.pad(wt_n, ((0, 0), (0, Cp - C)))

    labels2d = labels_i32.reshape(Bp, 1)

    kernel = functools.partial(_arcface_kernel, cos_m=math.cos(margin),
                               sin_m=math.sin(margin), scale=float(scale), tn=tn)

    vmem_limit = int(min(budget, max(2 * _vmem_estimate(bb, tn, D), 32 * 2 ** 20)))

    # TODO(synk): downstream cross-entropy is not fused here; output stays f32
    # [B, C] to match the module's forward (bf16 output would cut HBM writes).
    out = pl.pallas_call(
        kernel,
        out_shape=jax.ShapeDtypeStruct((Bp, Cp), jnp.float32),
        grid_spec=pltpu.PrefetchScalarGridSpec(
            num_scalar_prefetch=0,
            # class axis OUTER, batch axis INNER: the weight tile index only
            # changes with the outer axis, so each [D, tn] weight tile is
            # DMA'd once and reused across all batch tiles.
            grid=(n_ct, n_bt),
            in_specs=[
                pl.BlockSpec((bb, 1), lambda c, b: (b, 0)),   # labels
                pl.BlockSpec((bb, D), lambda c, b: (b, 0)),   # normalized embeddings
                pl.BlockSpec((D, tn), lambda c, b: (0, c)),   # normalized weight.T tile
            ],
            out_specs=pl.BlockSpec((bb, tn), lambda c, b: (b, c)),
        ),
        compiler_params=pltpu.CompilerParams(
            dimension_semantics=("parallel", "parallel"),
            vmem_limit_bytes=vmem_limit,
        ),
    )(labels2d, emb_n, wt_n)

    return out[:B, :C]


def arcface_reference_f32(embeddings, weight, labels, *, margin=0.5, scale=64.0):
    """Pure-JAX f32 reference mirroring the PyTorch forward."""
    emb_n = embeddings / jnp.maximum(
        jnp.linalg.norm(embeddings, axis=1, keepdims=True), 1e-12)
    w_n = weight / jnp.maximum(
        jnp.linalg.norm(weight, axis=1, keepdims=True), 1e-12)
    cosine = emb_n @ w_n.T
    one_hot = jax.nn.one_hot(labels, weight.shape[0], dtype=cosine.dtype)
    sine = jnp.sqrt(jnp.maximum(1.0 - cosine ** 2, 0.0))
    phi = cosine * math.cos(margin) - sine * math.sin(margin)
    return (one_hot * phi + (1.0 - one_hot) * cosine) * scale


def arcface_reference_bf16(embeddings, weight, labels, *, margin=0.5, scale=64.0):
    """Reference mirroring the kernel's f32-normalize -> bf16 MXU operands."""
    emb = embeddings.astype(jnp.float32)
    emb_n = (emb * lax.rsqrt(jnp.maximum(
        jnp.sum(emb * emb, axis=1, keepdims=True), 1e-24))).astype(jnp.bfloat16)
    w = weight.astype(jnp.float32)
    w_n = (w * lax.rsqrt(jnp.maximum(
        jnp.sum(w * w, axis=1, keepdims=True), 1e-24))).astype(jnp.bfloat16)
    cosine = jnp.dot(emb_n, w_n.T, preferred_element_type=jnp.float32)
    one_hot = jax.nn.one_hot(labels, weight.shape[0], dtype=cosine.dtype)
    sine = jnp.sqrt(jnp.maximum(1.0 - cosine ** 2, 0.0))
    phi = cosine * math.cos(margin) - sine * math.sin(margin)
    return (one_hot * phi + (1.0 - one_hot) * cosine) * scale


if __name__ == "__main__":
    # Small shapes consistent with the module's forward; C not a multiple of
    # 128 exercises the class-padding path, B=16 with block_b=8 exercises the
    # batch grid axis (2 batch tiles x 3 class tiles).
    B, D, C = 16, 128, 300
    margin, scale = 0.5, 64.0

    key = jax.random.PRNGKey(0)
    k_emb, k_w, k_lbl = jax.random.split(key, 3)

    embeddings = jax.random.normal(k_emb, (B, D), dtype=jnp.float32)
    bound = math.sqrt(6.0 / (C + D))            # xavier_uniform for [C, D]
    weight = jax.random.uniform(k_w, (C, D), dtype=jnp.float32,
                                minval=-bound, maxval=bound)
    labels = jax.random.randint(k_lbl, (B,), 0, C, dtype=jnp.int32)

    # Multi-tile path: 3 class tiles x 2 batch tiles.
    out_tiled = arcface_forward(embeddings, weight, labels,
                                margin=margin, scale=scale,
                                block_c=128, block_b=8)
    # Default large-tile path: single grid step (B and C each in one tile).
    out_default = arcface_forward(embeddings, weight, labels,
                                  margin=margin, scale=scale)
    out_tiled, out_default = jax.block_until_ready((out_tiled, out_default))

    ref_bf16 = arcface_reference_bf16(embeddings, weight, labels,
                                      margin=margin, scale=scale)
    ref_f32 = arcface_reference_f32(embeddings, weight, labels,
                                    margin=margin, scale=scale)

    assert out_tiled.shape == (B, C) and out_default.shape == (B, C)
    for out in (out_tiled, out_default):
        # Tight check vs a reference using the same bf16 MXU operands.
        assert float(jnp.max(jnp.abs(out - ref_bf16))) < 5e-2, \
            "mismatch vs bf16-operand reference"
        # Loose check vs exact-f32 PyTorch-equivalent math (bf16 rounding only).
        assert float(jnp.max(jnp.abs(out - ref_f32))) < 5e-1, \
            "mismatch vs f32 reference"

    print("KERNEL_OK")
</pallas_src>

<mosaic_0001>
module attributes {stable_mosaic.version = 11 : i64} {
  func.func @_arcface_kernel(%arg0: i32, %arg1: i32, %arg2: memref<8x1xi32, #tpu.memory_space<vmem>>, %arg3: memref<8x128xbf16, #tpu.memory_space<vmem>>, %arg4: memref<128x128xbf16, #tpu.memory_space<vmem>>, %arg5: memref<8x128xf32, #tpu.memory_space<vmem>>) attributes {dimension_semantics = [#tpu.dimension_semantics<parallel>, #tpu.dimension_semantics<parallel>], iteration_bounds = array<i64: 3, 2>, scalar_prefetch = 0 : i64, scratch_operands = 0 : i64, tpu.core_type = #tpu.core_type<tc>, window_params = [{transform_indices = @transform_0, window_bounds = array<i64: 8, 1>}, {transform_indices = @transform_1, window_bounds = array<i64: 8, 128>}, {transform_indices = @transform_2, window_bounds = array<i64: 128, 128>}, {transform_indices = @transform_3, window_bounds = array<i64: 8, 128>}]} {
    %c0 = arith.constant 0 : index
    %c0_0 = arith.constant 0 : index
    %0 = vector.load %arg3[%c0, %c0_0] : memref<8x128xbf16, #tpu.memory_space<vmem>>, vector<8x128xbf16>
    %c0_1 = arith.constant 0 : index
    %c0_2 = arith.constant 0 : index
    %1 = vector.load %arg4[%c0_1, %c0_2] : memref<128x128xbf16, #tpu.memory_space<vmem>>, vector<128x128xbf16>
    %cst = arith.constant dense<0.000000e+00> : vector<8x128xf32>
    %2 = tpu.matmul %0, %1, %cst {dimension_numbers = #tpu.dot_dimension_numbers<[1], [0], [0], [1], [0, 0, 1, 1], [], []>} : vector<8x128xbf16>, vector<128x128xbf16>, vector<8x128xf32> -> vector<8x128xf32>
    %c128_i32 = arith.constant 128 : i32
    %3 = arith.muli %arg0, %c128_i32 : i32
    %4 = tpu.iota {dimensions = array<i32: 1>} : vector<8x128xi32>
    %5 = vector.broadcast %3 : i32 to vector<8x128xi32>
    %6 = arith.addi %5, %4 : vector<8x128xi32>
    %c0_3 = arith.constant 0 : index
    %c0_4 = arith.constant 0 : index
    %7 = vector.load %arg2[%c0_3, %c0_4] : memref<8x1xi32, #tpu.memory_space<vmem>>, vector<8x1xi32>
    %8 = vector.broadcast %7 : vector<8x1xi32> to vector<8x128xi32>
    %9 = arith.cmpi eq, %6, %8 : vector<8x128xi32>
    %cst_5 = arith.constant 0.000000e+00 : f32
    %10 = vector.broadcast %cst_5 : f32 to vector<8x128xf32>
    %11 = arith.select %9, %2, %10 : vector<8x128xi1>, vector<8x128xf32>
    %cst_6 = arith.constant dense<0.000000e+00> : vector<8xf32>
    %12 = vector.multi_reduction <add>, %11, %cst_6 [1] : vector<8x128xf32> to vector<8xf32>
    %13 = vector.shape_cast %12 : vector<8xf32> to vector<8x1xf32>
    %14 = arith.mulf %13, %13 : vector<8x1xf32>
    %cst_7 = arith.constant 1.000000e+00 : f32
    %15 = vector.broadcast %cst_7 : f32 to vector<8x1xf32>
    %16 = arith.subf %15, %14 : vector<8x1xf32>
    %cst_8 = arith.constant 0.000000e+00 : f32
    %17 = vector.broadcast %cst_8 : f32 to vector<8x1xf32>
    %18 = arith.maximumf %16, %17 : vector<8x1xf32>
    %19 = math.sqrt %18 : vector<8x1xf32>
    %cst_9 = arith.constant 0.87758255 : f32
    %20 = vector.broadcast %cst_9 : f32 to vector<8x1xf32>
    %21 = arith.mulf %13, %20 : vector<8x1xf32>
    %cst_10 = arith.constant 0.47942555 : f32
    %22 = vector.broadcast %cst_10 : f32 to vector<8x1xf32>
    %23 = arith.mulf %19, %22 : vector<8x1xf32>
    %24 = arith.subf %21, %23 : vector<8x1xf32>
    %cst_11 = arith.constant 6.400000e+01 : f32
    %25 = vector.broadcast %cst_11 : f32 to vector<8x128xf32>
    %26 = arith.mulf %25, %2 : vector<8x128xf32>
    %27 = arith.subf %24, %13 : vector<8x1xf32>
    %cst_12 = arith.constant 6.400000e+01 : f32
    %28 = vector.broadcast %cst_12 : f32 to vector<8x1xf32>
    %29 = arith.mulf %28, %27 : vector<8x1xf32>
    %cst_13 = arith.constant 0.000000e+00 : f32
    %30 = vector.shape_cast %29 : vector<8x1xf32> to vector<8x1xf32>
    %31 = vector.broadcast %30 : vector<8x1xf32> to vector<8x128xf32>
    %32 = vector.broadcast %cst_13 : f32 to vector<8x128xf32>
    %33 = arith.select %9, %31, %32 : vector<8x128xi1>, vector<8x128xf32>
    %34 = arith.addf %26, %33 : vector<8x128xf32>
    %c0_14 = arith.constant 0 : index
    %c0_15 = arith.constant 0 : index
    %35 = vector.load %arg5[%c0_14, %c0_15] : memref<8x128xf32, #tpu.memory_space<vmem>>, vector<8x128xf32>
    tpu.vector_store %arg5[%c0_14, %c0_15], %34 {strides = array<i32>} : memref<8x128xf32, #tpu.memory_space<vmem>>, vector<8x128xf32>,
    return
  }
  func.func @transform_0(%arg0: i32, %arg1: i32) -> (i32, i32) {
    %c0_i32 = arith.constant 0 : i32
    %c0_i32_0 = arith.constant 0 : i32
    return %arg1, %c0_i32 : i32, i32
  }
  func.func @transform_1(%arg0: i32, %arg1: i32) -> (i32, i32) {
    %c0_i32 = arith.constant 0 : i32
    %c0_i32_0 = arith.constant 0 : i32
    return %arg1, %c0_i32 : i32, i32
  }
  func.func @transform_2(%arg0: i32, %arg1: i32) -> (i32, i32) {
    %c0_i32 = arith.constant 0 : i32
    %c0_i32_0 = arith.constant 0 : i32
    return %c0_i32, %arg0 : i32, i32
  }
  func.func @transform_3(%arg0: i32, %arg1: i32) -> (i32, i32) {
    %c0_i32 = arith.constant 0 : i32
    return %arg1, %arg0 : i32, i32
  }
}

</mosaic_0001>

<bundles_post_ra>
// kernel: tpu_custom_call.1
= control target key start
LH: loop header
LB: loop body
LE: loop exit
PB: predicated region body
PF: predicated region fallthrough
CT: control target
= control target key end

     0   :  { %8 = vsyncpa [#allocation3], 0  ;;  %s1090_s0 = inlined_call_operand.vmem [shape: s32[16,1], index: 0, kind: input, shape index: {}]   ;;  %s1091_s1 = inlined_call_operand.vmem [shape: bf16[16,128], index: 1, kind: input, shape index: {}]   ;;  %s1092_s2 = inlined_call_operand.hbm [shape: bf16[128,384], index: 2, kind: input, shape index: {}]   ;;  %s1093_s3 = inlined_call_operand.hbm [shape: f32[16,384], index: 3, kind: output, shape index: {}]  }
   0x1   :  { %10 = vsyncpa [#allocation3 + $0x1], 0 }
   0x2   :  { %11 = vsyncpa [#allocation4], 0 }
   0x3   :  { %13 = vsyncpa [#allocation4 + $0x1], 0  ;;  %s852_s12 = smov 0   ;;  %s854_s13 = smov 0  }
   0x4   :  { %s856_s14 = smov 0   ;;  %s858_s15 = smov 0  }
   0x5   :  { %s860_s16 = smov 0   ;;  %s862_s17 = smov 0  }
   0x6   :  { %s864_s18 = smov 0   ;;  %s866_s19 = smov 0  }
   0x7   :  { %s868_s20 = smov 0   ;;  %s870_s21 = smov 0  }
   0x8   :  { %s872_s22 = smov 0  }
   0x9 LB: > { %s497_s23 = sadd.s32 4294967295, %s822_s22   ;;  %s498_s24 = sadd.s32 4294967294, %s822_s22   ;;  %s822_s22 = sphi %s872_s22, %s19_s22   ;;  %s818_s21 = sphi %s870_s21, %s1114_s21   ;;  %s814_s20 = sphi %s868_s20, %s1113_s20   ;;  %s810_s19 = sphi %s866_s19, %s1112_s19   ;;  %s806_s18 = sphi %s864_s18, %s1111_s18   ;;  %s802_s17 = sphi %s862_s17, %s1110_s17   ;;  %s798_s16 = sphi %s860_s16, %s1109_s16   ;;  %s794_s15 = sphi %s858_s15, %s1108_s15   ;;  %s790_s14 = sphi %s856_s14, %s1107_s14   ;;  %s786_s13 = sphi %s854_s13, %s1106_s13   ;;  %s782_s12 = sphi %s852_s12, %s1105_s12  }
   0xa   : > { %s28_s25 = sadd.s32 1, %s814_s20  ;;  %s31_s26 = sadd.s32 1, %s818_s21 }
   0xb   : > { %p29_p0 = scmp.ge.s32.totalorder %s28_s25, 2  ;;  %s90_s27 = sadd.s32 1, %s802_s17 }
   0xc   : > { %p97_p1 = scmp.ne.s32.totalorder %s802_s17, %s798_s16  ;;  %p98_p2 = scmp.eq.s32.totalorder %s822_s22, 0 }
   0xd   : > { %s1116_s25 = smov (%p29_p0, %s28_s25), 0  ;;  %s1118_s26 = smov (!%p29_p0, %s31_s26), %s818_s21 }
   0xe   : > { %p916_p3 = por %p98_p2, %p97_p1  ;;  %p103_p4 = scmp.ne.s32.totalorder %s798_s16, %s794_s15 }
   0xf   : > { %p33_p5 = scmp.ge.s32.totalorder %s1118_s26, 3  ;;  %p104_p6 = scmp.eq.s32.totalorder %s497_s23, 0 }
  0x10   : > { %s113_s29 = ssub.s32 %s814_s20, %s1116_s25  ;;  %s118_s30 = sadd.s32 1, %s790_s14 }
  0x11   : > { %s1120_s26 = smov (%p33_p5, %s1118_s26), 0  ;;  %p926_p7 = por %p104_p6, %p103_p4 }
  0x12   : > { %1097 = sst [smem:[#allocation8_spill]] %s1120_s26  ;;  %p128_p8 = scmp.ne.s32.totalorder %s790_s14, %s786_s13 }
  0x13   : > { %s87_s5 = ssub.s32 %s818_s21, %s1120_s26  ;;  %p129_p9 = scmp.eq.s32.totalorder %s497_s23, 5 }
  0x14   : > { %p88_p10 = scmp.eq.s32.totalorder %s87_s5, 0  ;;  %s115_s6 = sor.u32 %s113_s29, %s87_s5 }
  0x15   : > { %p116_p11 = scmp.eq.s32.totalorder %s115_s6, 0  ;;  %p934_p12 = por %p129_p9, %p128_p8 }
  0x16   : > { %s939_s8 = scalar_select %p88_p10, %s802_s17, %s90_s27  }
  0x17   : > { %s1099_s7 = scalar_select %p934_p12, 1, 0 }
  0x18   : > { %s942_s9 = scalar_select %p116_p11, %s790_s14, %s118_s30  }
  0x19   : > { %p134_p13 = scmp.ne.s32.totalorder %s786_s13, %s782_s12  ;;  %p135_p0 = scmp.eq.s32.totalorder %s498_s24, 5 }
  0x1a   : > { %p563_p1 = scmp.lt.s32.totalorder %s822_s22, 6  ;;  %s169_s11 = sand.u32 1, %s802_s17  }
  0x1b   : > { %p947_p2 = por %p135_p0, %p134_p13  ;;  %s501_s15 = sshll.u32 %s169_s11, 6 }
  0x1c   : > { %s502_s23 = sshll.u32 %s818_s21, 6  ;;  %s173_s27 = scalar_lea.vmem [#allocation2], %s501_s15 }
  0x1d   : > { %s1100_s10 = scalar_select %p947_p2, 1, 0 }
  0x1e   : > { %s956_s6 = scalar_lea.hbm %s1092_s2, %s502_s23  ;;  %s179_s30 = sshll.u32 %s173_s27, 4  ;;  %s958_s30 = int_to_ptr.vmem [resolvable:$true] %s179_s30 }
  0x1f   : > { %p962_p4 = pnand %p563_p1, %p916_p3  ;;  %s966_s26 = scalar_lea.sflag [#allocation3], %s169_s11 }
  0x20   : > { %s670_s29 = scalar_lea.hbm %s956_s6, 1024  ;;  %s675_s28 = scalar_lea.hbm %s1092_s2, 3072 }
  0x21   : > { %p671_p5 = scmp.ne.s32.totalorder %s956_s6, %s670_s29  ;;  %p672_p6 = pneg %p962_p4 }
  0x22   : > { %p676_p3 = scmp.lt.u32.totalorder %s956_s6, %s1092_s2  ;;  %p677_p10 = scmp.lt.u32.totalorder %s675_s28, %s670_s29 }
  0x23   : > { %p673_p8 = pnand %p672_p6, %p671_p5  ;;  %p679_p13 = scmp.lt.u32.totalorder %s670_s29, %s956_s6 }
  0x24   : > { %p678_p11 = por %p677_p10, %p676_p3 }
  0x25   : > { %p674_p9 = pneg %p673_p8 }
  0x26   : > { %p680_p0 = por %p679_p13, %p678_p11 }
  0x28   : > { %p681_p1 = pnand %p680_p0, %p674_p9 }
  0x2a   : > { %684 = shalt.err (!%p681_p1)
}
  0x2b   : > { %s685_s11 = scalar_lea.vmem %s958_s30, 1024  ;;  %s824_s15 = smov [#allocation2]  }
  0x2c   : > { %p686_p5 = scmp.ne.s32.totalorder %s958_s30, %s685_s11  ;;  %s690_s23 = sshll.u32 %s824_s15, 4  ;;  %s691_s23 = int_to_ptr.vmem [resolvable:$false] %s690_s23 }
  0x2d   : > { %s692_s5 = scalar_lea.vmem %s691_s23, 2048  ;;  %p693_p12 = scmp.lt.s32.totalorder %s958_s30, %s691_s23 }
  0x2e   : > { %p688_p8 = pnand %p686_p5, %p672_p6  ;;  %p694_p3 = scmp.lt.s32.totalorder %s692_s5, %s685_s11 }
  0x30   : > { %p689_p2 = pneg %p688_p8  ;;  %p695_p10 = por %p694_p3, %p693_p12 }
  0x32   : > { %p696_p11 = pnand %p695_p10, %p689_p2 }
  0x34   : > { %699 = shalt.err (!%p696_p11)
}
  0x35   : > { %s825_s29 = smov 192   ;;  %s826_s28 = smov 64  }
  0x36   : > { %s827_s27 = smov 4   ;;  %p503_p6 = scmp.ge.s32.totalorder %s822_s22, 1 }
  0x37   : > { %558 = dma.hbm_to_vmem [thread:$0]  (!%p962_p4), %s956_s6, 1024, %s958_s30, %s966_s26, %s825_s29, %s826_s28, %s827_s27  }
  0x38   : > { %p187_p9 = scmp.lt.s32.totalorder %s822_s22, 7 }
  0x3a   : > { %p188_p13 = pnand %p503_p6, %p187_p9 }
  0x3b   : > { %s193_s11 = sand.u32 (!%p188_p13), 1, %s798_s16  }
  0x3c   : > { %191 = sbr.rel (%p188_p13) target bundleno = 502 (0x1f6), region = 32  ;;  %s504_s15 = sshll.u32 (!%p188_p13), %s193_s11, 6 }
  0x3d   : > { %s194_s23 = scalar_lea.sflag (!%p188_p13), [#allocation3], %s193_s11  ;;  %s997_s5 = scalar_lea.vmem (!%p188_p13), [#allocation2], %s504_s15 }
  0x43   : > { %773 = dma.done.wait (%p926_p7), %s194_s23, 1024  }
  0x44   : > { %775 = vsyncadd (%p926_p7), %s194_s23, 4294966272  ;;  %v828_v0 = vmov 0.0   ;;  %vm829_vm0 = vmmov 0   ;;  %v830_v1 = vmov 0   ;;  %p228_p12 = scmp.lt.s32.totalorder %s806_s18, 1  ;;  %v660_v2 = vld [vmem:[%s997_s5] sm:$0xff]   ;;  %v343_v12 = vlaneseq }
  0x45   : > { %530 = vmatprep.subr.bf16.mxu0 %v828_v0  ;;  %546 = vmatprep.mubr.msk.bf16.mxu0 %vm829_vm0, %v828_v0  ;;  %v661_v3 = vld [vmem:[%s997_s5 + $0x8] sm:$0xff]   ;;  %v662_v4 = vld [vmem:[%s997_s5 + $0x10] sm:$0xff]   ;;  %v663_v6 = vld [vmem:[%s997_s5 + $0x18] sm:$0xff]   ;;  %s516_s15 = sshll.u32 %s810_s19, 7  ;;  %s225_s23 = sand.u32 1, %s786_s13  }
  0x46   : > { %659 = vset.pattern.permute.xlu0 %v830_v1  ;;  %s229_s26 = scalar_select %p228_p12, %s806_s18, 1  ;;  %531 = vmatpush3.bf16.msra.mxu0 %v660_v2  ;;  %v664_v7 = vld [vmem:[%s997_s5 + $0x20] sm:$0xff]   ;;  %v665_v8 = vld [vmem:[%s997_s5 + $0x28] sm:$0xff]   ;;  %v666_v9 = vld [vmem:[%s997_s5 + $0x30] sm:$0xff]   ;;  %v344_v13 = vand.u32 127, %v343_v12  ;;  %v345_v14 = vstv %s516_s15 }
  0x47   : > { %532 = vmatprep.subr.bf16.mxu0 %v828_v0  ;;  %v667_v10 = vld [vmem:[%s997_s5 + $0x38] sm:$0xff]   ;;  %s550_s5 = smul.u32 3, %s806_s18  ;;  %s375_s18 = scalar_lea.sflag [#allocation4], %s225_s23 }
  0x48   : > { %s506_s4 = sshll.u32 %s229_s26, 3  ;;  %s507_s29 = sshll.u32 %s229_s26, 2  ;;  %v346_v15 = vadd.s32 %v345_v14, %v344_v13 }
  0x49   : > { %s231_s24 = scalar_lea.vmem %s1090_s0, %s506_s4  ;;  %s235_s11 = scalar_lea.vmem %s1091_s1, %s507_s29 }
  0x4a   : > { %533 = vmatpush3.bf16.msra.mxu0 %v661_v3  ;;  %v347_v5 = vld [vmem:[%s231_s24] sm:$0xff]  ;;  %s505_s26 = sshll.u32 %s225_s23, 3  ;;  %s386_s4 = sadd.s32 %s810_s19, %s550_s5 }
  0x4b   : > { %534 = vmatprep.subr.bf16.mxu0 %v828_v0  ;;  %349 = vperm.xlu0 %659, %v347_v5   ;;  %v237_v11 = vld [vmem:[%s235_s11] sm:$0xf]  ;;  %s518_s6 = sshll.u32 %s386_s4, 7  ;;  %s227_s30 = scalar_lea.vmem [#allocation5], %s505_s26 }
  0x4c   : > { %s390_s24 = sshll.u32 %s227_s30, 4  ;;  %s1028_s27 = scalar_lea.hbm %s1093_s3, %s518_s6  ;;  %s1030_s24 = int_to_ptr.vmem [resolvable:$true] %s390_s24 }
  0x4d   : > { %s700_s19 = scalar_lea.vmem %s1030_s24, 128  ;;  %p1102_p2 = scmp.ne.s32.totalorder %s1099_s7, 0 }
  0x4e   : > { %535 = vmatpush3.bf16.msra.mxu0 %v662_v4  ;;  %p701_p7 = scmp.ne.s32.totalorder %s1030_s24, %s700_s19  ;;  %s831_s11 = smov [#allocation5]  }
  0x4f   : > { %536 = vmatprep.subr.bf16.mxu0 %v828_v0  ;;  %s704_s15 = sshll.u32 %s831_s11, 4  ;;  %s705_s15 = int_to_ptr.vmem [resolvable:$false] %s704_s15 }
  0x50   : > { %p702_p4 = pnand %p701_p7, %p1102_p2  ;;  %s706_s5 = scalar_lea.vmem %s705_s15, 256 }
  0x51   : > { %p707_p1 = scmp.lt.s32.totalorder %s1030_s24, %s705_s15  ;;  %p708_p5 = scmp.lt.s32.totalorder %s706_s5, %s700_s19 }
  0x52   : > { %537 = vmatpush3.bf16.msra.mxu0 %v663_v6  ;;  %p703_p0 = pneg %p702_p4 }
  0x53   : > { %538 = vmatprep.subr.bf16.mxu0 %v828_v0  ;;  %p709_p8 = por %p708_p5, %p707_p1 }
  0x55   : > { %p710_p3 = pnand %p709_p8, %p703_p0 }
  0x56   : > { %539 = vmatpush3.bf16.msra.mxu0 %v664_v7 }
  0x57   : > { %540 = vmatprep.subr.bf16.mxu0 %v828_v0 }
  0x5a   : > { %541 = vmatpush3.bf16.msra.mxu0 %v665_v8 }
  0x5b   : > { %542 = vmatprep.subr.bf16.mxu0 %v828_v0 }
  0x5e   : > { %543 = vmatpush3.bf16.msra.mxu0 %v666_v9 }
  0x5f   : > { %544 = vmatprep.subr.bf16.mxu0 %v828_v0 }
  0x62   : > { %545 = vmatpush3.bf16.msra.mxu0 %v667_v10 }
  0x65   : > { %547 = vmatmul.mubr.bf16.vlgmr.msra.gmra.mrb[0].mxu0 %v237_v11 }
  0xca   : > { %v350_v16 = vpop.permute.xlu0 %349 }
  0xcb   : > { %vm351_vm1 = vcmp.eq.s32.totalorder %v346_v15, %v350_v16 }
 0x138   : > { %v336_v17 = vpop.f32.mrb[0].mxu0 }
 0x139   : > { %v548_v18 = vpop.f32.mrb[1].mxu0  ;;  %v352_v19 = vsel %vm351_vm1, %v336_v17, 0.0  ;;  %v368_v36 = vmul.f32 64.0, %v336_v17 }
 0x13a   : > { %353 = vadd.xlane.f32.xlu0 %v352_v19  ;;  %v339_v20 = vpop.f32.mrb[2].mxu0 }
 0x13b   : > { %v549_v21 = vpop.f32.mrb[3].mxu0 }
 0x1c7   : > { %v354_v22 = vpop.xlane.xlu0 %353 }
 0x1c8   : > { %v355_v23 = vmul.f32 %v354_v22, %v354_v22  ;;  %v365_v31 = vmul.f32 0.87758255, %v354_v22 }
 0x1ca   : > { %v356_v24 = vsub.f32 1.0, %v355_v23 }
 0x1cc   : > { %v357_v25 = vmax.f32 %v356_v24, 0.0 }
 0x1ce   : > { %668 = vrsqrt.f32 %v357_v25  ;;  %vm360_vm2 = vcmp.eq.f32.partialorder %v357_v25, inf  ;;  %v363_v28 = vand.u32 2147483648, %v357_v25  ;;  %vm362_vm3 = vcmp.eq.f32.partialorder %v357_v25, 0.0 }
 0x1d8   : > { %v669_v26 = vpop.eup %668 }
 0x1d9   : > { %v359_v27 = vmul.f32 %v669_v26, %v357_v25 }
 0x1db   : > { %v361_v29 = vsel %vm360_vm2, %v357_v25, %v359_v27 }
 0x1dc   : > { %v364_v30 = vsel %vm362_vm3, %v363_v28, %v361_v29 }
 0x1dd   : > { %v366_v32 = vmul.f32 0.47942555, %v364_v30 }
 0x1df   : > { %v367_v33 = vsub.f32 %v365_v31, %v366_v32 }
 0x1e1   : > { %v369_v34 = vsub.f32 %v367_v33, %v354_v22 }
 0x1e3   : > { %v370_v35 = vmul.f32 64.0, %v369_v34 }
 0x1e5   : > { %v371_v37 = vsel %vm351_vm1, %v370_v35, 0.0 }
 0x1e6   : > { %v372_v38 = vadd.f32 %v371_v37, %v368_v36 }
 0x1e8   : > { %373 = vst [vmem:[%s227_s30] sm:$0xff] %v372_v38 }
 0x1e9   : > { %713 = shalt.err (!%p710_p3)
}
 0x1ea   : > { %s714_s23 = scalar_lea.hbm %s1028_s27, 128  ;;  %s718_s6 = scalar_lea.hbm %s1093_s3, 768 }
 0x1eb   : > { %p715_p10 = scmp.ne.s32.totalorder %s1028_s27, %s714_s23  ;;  %p719_p9 = scmp.lt.u32.totalorder %s1028_s27, %s1093_s3 }
 0x1ec   : > { %p720_p13 = scmp.lt.u32.totalorder %s718_s6, %s714_s23  ;;  %p722_p7 = scmp.lt.u32.totalorder %s714_s23, %s1028_s27 }
 0x1ed   : > { %p716_p11 = pnand %p715_p10, %p1102_p2 }
 0x1ee   : > { %p721_p12 = por %p720_p13, %p719_p9 }
 0x1ef   : > { %p717_p6 = pneg %p716_p11 }
 0x1f0   : > { %p723_p4 = por %p722_p7, %p721_p12 }
 0x1f2   : > { %p724_p0 = pnand %p723_p4, %p717_p6 }
 0x1f4   : > { %727 = shalt.err (!%p724_p0)
}
 0x1f5   : > { %553 = dma.vmem_to_hbm [thread:$0]  (%p1102_p2), %s1030_s24, 128, %s1028_s27, %s375_s18  }
 0x1f6 PF: > { %p564_p1 = scmp.ge.s32.totalorder %s822_s22, 2  ;;  %s402_s28 = sand.u32 1, %s782_s12  }
 0x1f7   : > { %p1103_p5 = scmp.ne.s32.totalorder %s1100_s10, 0  ;;  %s403_s19 = scalar_lea.sflag [#allocation4], %s402_s28 }
 0x1f9   : > { %p560_p8 = pnand %p564_p1, %p1103_p5 }
 0x1fb   : > { %777 = dma.done.wait (!%p560_p8), %s403_s19, 128  }
 0x1fc   : > { %779 = vsyncadd (!%p560_p8), %s403_s19, 4294967168  ;;  %s19_s22 = sadd.s32 1, %s822_s22   ;;  %s1104_s7 = sld [smem:[#allocation8_spill]] }
 0x1fd   : > { %p16_p3 = scmp.ge.s32.totalorder %s19_s22, 8   ;;  %s1105_s12 = smov %s786_s13 }
 0x1fe   : > { %s1106_s13 = smov %s790_s14  ;;  %s1107_s14 = smov %s942_s9 }
 0x1ff   : > { %s1108_s15 = smov %s798_s16  ;;  %s1109_s16 = smov %s802_s17 }
 0x200   : > { %s1110_s17 = smov %s939_s8  ;;  %s1111_s18 = smov %s814_s20 }
 0x201   : > { %s1112_s19 = smov %s818_s21  ;;  %s1113_s20 = smov %s1116_s25 }
 0x202   : > { %s1114_s21 = smov %s1104_s7  ;;  %18 = sbr.rel (!%p16_p3) target bundleno = 9 (0x9), region = 83 }
 0x209   :  { %408 = vsyncpa [#allocation3], 1 }
 0x20a   :  { %410 = vsyncpa [#allocation3 + $0x1], 1 }
 0x20b   :  { %411 = vsyncpa [#allocation4], 1 }
 0x20c   :  { %413 = vsyncpa [#allocation4 + $0x1], 1 }

</bundles_post_ra>
